<compile_context>
chip_gen: v7x
topology: tpu7x:2x2x1
jax: 0.10.0
libtpu: 0.0.40
codegen_flags: <defaults>
</compile_context>

<pallas_src>
import jax
import jax.numpy as jnp
from jax.experimental import pallas as pl
from jax.experimental.pallas import tpu as pltpu

ROW_TILE = 1024          # max rows (of 128 lanes) per grid step
PALLAS_MIN_BATCH = 4096  # below this, plain jnp beats a kernel launch


def net_kernel(c_ref, x_ref, h1_ref, h2_ref, h3_ref):
    """7 scalar-broadcast multiplies on a lane-dense batch tile (VPU only).

    c_ref  : SMEM f32[7]   composed coefficients [a0,a1,a2, b0,b1,b2, c0]
    x_ref  : VMEM f32[(tile_r, 128)]   lane-dense batch tile
    h1_ref : VMEM f32[(3, tile_r, 128)]
    h2_ref : VMEM f32[(3, tile_r, 128)]
    h3_ref : VMEM f32[(1, tile_r, 128)]
    """
    x = x_ref[...]                      # one full-vreg-aligned load
    # fc1 (composed): h1[j] = x * a[j]
    h1_ref[0] = x * c_ref[0]
    h1_ref[1] = x * c_ref[1]
    h1_ref[2] = x * c_ref[2]
    # fc2 (composed): h2[j] = x * (w2 @ a)[j]
    h2_ref[0] = x * c_ref[3]
    h2_ref[1] = x * c_ref[4]
    h2_ref[2] = x * c_ref[5]
    # fc3 (composed): h3 = x * (w3 @ w2 @ a)[0]
    h3_ref[0] = x * c_ref[6]


def _choose_row_tile(rp):
    """Pick rows-per-step: as big as possible (<= ROW_TILE), multiple of 8,
    and >= 2 grid steps once the batch is non-trivial (v7x has 2 TCs)."""
    if rp <= 16:
        return rp                        # single block; real tiny B uses the jnp fallback
    t = min(ROW_TILE, pl.cdiv(rp, 2))    # guarantee >= 2 grid steps
    return max(8, (t // 8) * 8)          # keep the sublane dim a multiple of 8


def net_forward(x, w1, w2, w3, *, force_pallas=False):
    """x: (B, 1); w1: (3, 1); w2: (3, 3); w3: (1, 3) -> [h1 (B,3), h2 (B,3), h3 (B,1)]."""
    B, n_in = x.shape
    h1_dim, h2_dim, out_dim = w1.shape[0], w2.shape[0], w3.shape[0]
    assert (n_in, h1_dim, h2_dim, out_dim) == (1, 3, 3, 1), "Net is 1->3->3->1"

    w1 = w1.astype(jnp.float32)
    w2 = w2.astype(jnp.float32)
    w3 = w3.astype(jnp.float32)

    # Fold the three linears into 7 composed coefficients (tiny host-side matmuls).
    a = w1[:, 0]        # (3,)
    b = w2 @ a          # (3,)
    c = w3 @ b          # (1,)

    # Small-batch fallback: fused XLA elementwise beats kernel-launch overhead.
    if B < PALLAS_MIN_BATCH and not force_pallas:
        xf = x.astype(jnp.float32)
        return [xf * a[None, :], xf * b[None, :], xf * c[None, :]]

    coeffs = jnp.concatenate([a, b, c])          # f32[7] -> SMEM via scalar prefetch

    # Lane-dense batch layout: (B,) -> pad to a multiple of 128 -> (Rp, 128).
    rp = pl.cdiv(B, 128)
    bp = rp * 128
    x_flat = x.reshape(B).astype(jnp.float32)
    if bp != B:
        x_flat = jnp.pad(x_flat, (0, bp - B))
    x_slab = x_flat.reshape(rp, 128)

    tile_r = _choose_row_tile(rp)
    grid = (pl.cdiv(rp, tile_r),)                # ragged tail handled by block clipping

    h1_slab, h2_slab, h3_slab = pl.pallas_call(
        net_kernel,
        out_shape=(
            jax.ShapeDtypeStruct((3, rp, 128), jnp.float32),
            jax.ShapeDtypeStruct((3, rp, 128), jnp.float32),
            jax.ShapeDtypeStruct((1, rp, 128), jnp.float32),
        ),
        grid_spec=pltpu.PrefetchScalarGridSpec(
            num_scalar_prefetch=1,
            grid=grid,
            in_specs=[pl.BlockSpec((tile_r, 128), lambda i, c_ref: (i, 0))],
            out_specs=(
                pl.BlockSpec((3, tile_r, 128), lambda i, c_ref: (0, i, 0)),
                pl.BlockSpec((3, tile_r, 128), lambda i, c_ref: (0, i, 0)),
                pl.BlockSpec((1, tile_r, 128), lambda i, c_ref: (0, i, 0)),
            ),
        ),
        compiler_params=pltpu.CompilerParams(
            dimension_semantics=("parallel",)),  # rows independent; v7x splits across TCs
    )(coeffs, x_slab)

    # Layout plumbing back to module semantics: (n_feat, Rp, 128) -> (B, n_feat).
    def unpack(slab, n_feat):
        return slab.reshape(n_feat, bp)[:, :B].T

    return [unpack(h1_slab, h1_dim), unpack(h2_slab, h2_dim), unpack(h3_slab, out_dim)]


if __name__ == "__main__":
    key = jax.random.PRNGKey(0)
    k_x, k1, k2, k3 = jax.random.split(key, 4)

    # deterministic synthetic parameters (PyTorch Linear weight shape: (out, in))
    w1 = jax.random.normal(k1, (3, 1), dtype=jnp.float32) * 0.5
    w2 = jax.random.normal(k2, (3, 3), dtype=jnp.float32) * 0.5
    w3 = jax.random.normal(k3, (1, 3), dtype=jnp.float32) * 0.5

    # B=2: small shape consistent with the module; B=2500: ragged multi-tile grid.
    for B in (2, 2500):
        xb = jax.random.normal(jax.random.fold_in(k_x, B), (B, 1), dtype=jnp.float32)

        outs = net_forward(xb, w1, w2, w3, force_pallas=True)
        outs = jax.block_until_ready(outs)

        # reference in plain JAX
        ref1 = xb @ w1.T
        ref2 = ref1 @ w2.T
        ref3 = ref2 @ w3.T
        for got, ref in zip(outs, (ref1, ref2, ref3)):
            assert got.shape == ref.shape, (got.shape, ref.shape)
            assert jnp.allclose(got, ref, atol=1e-5, rtol=1e-5), (
                B, float(jnp.abs(got - ref).max()))

    print("KERNEL_OK")
</pallas_src>

<mosaic_0001>
module attributes {stable_mosaic.version = 11 : i64} {
  func.func @net_kernel(%arg0: i32, %arg1: memref<7xf32, #tpu.memory_space<smem>>, %arg2: memref<1x128xf32, #tpu.memory_space<vmem>>, %arg3: memref<3x1x128xf32, #tpu.memory_space<vmem>>, %arg4: memref<3x1x128xf32, #tpu.memory_space<vmem>>, %arg5: memref<1x1x128xf32, #tpu.memory_space<vmem>>) attributes {dimension_semantics = [#tpu.dimension_semantics<parallel>], iteration_bounds = array<i64: 1>, scalar_prefetch = 1 : i64, scratch_operands = 0 : i64, tpu.core_type = #tpu.core_type<tc>, window_params = [{transform_indices = @transform_0, window_bounds = array<i64: 1, 128>}, {transform_indices = @transform_1, window_bounds = array<i64: 3, 1, 128>}, {transform_indices = @transform_2, window_bounds = array<i64: 3, 1, 128>}, {transform_indices = @transform_3, window_bounds = array<i64: 1, 1, 128>}]} {
    %c0 = arith.constant 0 : index
    %c0_0 = arith.constant 0 : index
    %0 = vector.load %arg2[%c0, %c0_0] : memref<1x128xf32, #tpu.memory_space<vmem>>, vector<1x128xf32>
    %c0_1 = arith.constant 0 : index
    %1 = memref.load %arg1[%c0_1] : memref<7xf32, #tpu.memory_space<smem>>
    %2 = vector.broadcast %1 : f32 to vector<1x128xf32>
    %3 = arith.mulf %0, %2 : vector<1x128xf32>
    %c0_2 = arith.constant 0 : index
    %c0_3 = arith.constant 0 : index
    %c0_4 = arith.constant 0 : index
    %4 = vector.load %arg3[%c0_2, %c0_3, %c0_4] : memref<3x1x128xf32, #tpu.memory_space<vmem>>, vector<1x1x128xf32>
    %5 = vector.shape_cast %4 : vector<1x1x128xf32> to vector<1x128xf32>
    %6 = vector.shape_cast %3 : vector<1x128xf32> to vector<1x1x128xf32>
    tpu.vector_store %arg3[%c0_2, %c0_3, %c0_4], %6 {strides = array<i32>} : memref<3x1x128xf32, #tpu.memory_space<vmem>>, vector<1x1x128xf32>,
    %c1 = arith.constant 1 : index
    %7 = memref.load %arg1[%c1] : memref<7xf32, #tpu.memory_space<smem>>
    %8 = vector.broadcast %7 : f32 to vector<1x128xf32>
    %9 = arith.mulf %0, %8 : vector<1x128xf32>
    %c1_5 = arith.constant 1 : index
    %c0_6 = arith.constant 0 : index
    %c0_7 = arith.constant 0 : index
    %10 = vector.load %arg3[%c1_5, %c0_6, %c0_7] : memref<3x1x128xf32, #tpu.memory_space<vmem>>, vector<1x1x128xf32>
    %11 = vector.shape_cast %10 : vector<1x1x128xf32> to vector<1x128xf32>
    %12 = vector.shape_cast %9 : vector<1x128xf32> to vector<1x1x128xf32>
    tpu.vector_store %arg3[%c1_5, %c0_6, %c0_7], %12 {strides = array<i32>} : memref<3x1x128xf32, #tpu.memory_space<vmem>>, vector<1x1x128xf32>,
    %c2 = arith.constant 2 : index
    %13 = memref.load %arg1[%c2] : memref<7xf32, #tpu.memory_space<smem>>
    %14 = vector.broadcast %13 : f32 to vector<1x128xf32>
    %15 = arith.mulf %0, %14 : vector<1x128xf32>
    %c2_8 = arith.constant 2 : index
    %c0_9 = arith.constant 0 : index
    %c0_10 = arith.constant 0 : index
    %16 = vector.load %arg3[%c2_8, %c0_9, %c0_10] : memref<3x1x128xf32, #tpu.memory_space<vmem>>, vector<1x1x128xf32>
    %17 = vector.shape_cast %16 : vector<1x1x128xf32> to vector<1x128xf32>
    %18 = vector.shape_cast %15 : vector<1x128xf32> to vector<1x1x128xf32>
    tpu.vector_store %arg3[%c2_8, %c0_9, %c0_10], %18 {strides = array<i32>} : memref<3x1x128xf32, #tpu.memory_space<vmem>>, vector<1x1x128xf32>,
    %c3 = arith.constant 3 : index
    %19 = memref.load %arg1[%c3] : memref<7xf32, #tpu.memory_space<smem>>
    %20 = vector.broadcast %19 : f32 to vector<1x128xf32>
    %21 = arith.mulf %0, %20 : vector<1x128xf32>
    %c0_11 = arith.constant 0 : index
    %c0_12 = arith.constant 0 : index
    %c0_13 = arith.constant 0 : index
    %22 = vector.load %arg4[%c0_11, %c0_12, %c0_13] : memref<3x1x128xf32, #tpu.memory_space<vmem>>, vector<1x1x128xf32>
    %23 = vector.shape_cast %22 : vector<1x1x128xf32> to vector<1x128xf32>
    %24 = vector.shape_cast %21 : vector<1x128xf32> to vector<1x1x128xf32>
    tpu.vector_store %arg4[%c0_11, %c0_12, %c0_13], %24 {strides = array<i32>} : memref<3x1x128xf32, #tpu.memory_space<vmem>>, vector<1x1x128xf32>,
    %c4 = arith.constant 4 : index
    %25 = memref.load %arg1[%c4] : memref<7xf32, #tpu.memory_space<smem>>
    %26 = vector.broadcast %25 : f32 to vector<1x128xf32>
    %27 = arith.mulf %0, %26 : vector<1x128xf32>
    %c1_14 = arith.constant 1 : index
    %c0_15 = arith.constant 0 : index
    %c0_16 = arith.constant 0 : index
    %28 = vector.load %arg4[%c1_14, %c0_15, %c0_16] : memref<3x1x128xf32, #tpu.memory_space<vmem>>, vector<1x1x128xf32>
    %29 = vector.shape_cast %28 : vector<1x1x128xf32> to vector<1x128xf32>
    %30 = vector.shape_cast %27 : vector<1x128xf32> to vector<1x1x128xf32>
    tpu.vector_store %arg4[%c1_14, %c0_15, %c0_16], %30 {strides = array<i32>} : memref<3x1x128xf32, #tpu.memory_space<vmem>>, vector<1x1x128xf32>,
    %c5 = arith.constant 5 : index
    %31 = memref.load %arg1[%c5] : memref<7xf32, #tpu.memory_space<smem>>
    %32 = vector.broadcast %31 : f32 to vector<1x128xf32>
    %33 = arith.mulf %0, %32 : vector<1x128xf32>
    %c2_17 = arith.constant 2 : index
    %c0_18 = arith.constant 0 : index
    %c0_19 = arith.constant 0 : index
    %34 = vector.load %arg4[%c2_17, %c0_18, %c0_19] : memref<3x1x128xf32, #tpu.memory_space<vmem>>, vector<1x1x128xf32>
    %35 = vector.shape_cast %34 : vector<1x1x128xf32> to vector<1x128xf32>
    %36 = vector.shape_cast %33 : vector<1x128xf32> to vector<1x1x128xf32>
    tpu.vector_store %arg4[%c2_17, %c0_18, %c0_19], %36 {strides = array<i32>} : memref<3x1x128xf32, #tpu.memory_space<vmem>>, vector<1x1x128xf32>,
    %c6 = arith.constant 6 : index
    %37 = memref.load %arg1[%c6] : memref<7xf32, #tpu.memory_space<smem>>
    %38 = vector.broadcast %37 : f32 to vector<1x128xf32>
    %39 = arith.mulf %0, %38 : vector<1x128xf32>
    %c0_20 = arith.constant 0 : index
    %c0_21 = arith.constant 0 : index
    %c0_22 = arith.constant 0 : index
    %40 = vector.load %arg5[%c0_20, %c0_21, %c0_22] : memref<1x1x128xf32, #tpu.memory_space<vmem>>, vector<1x1x128xf32>
    %41 = vector.shape_cast %40 : vector<1x1x128xf32> to vector<1x128xf32>
    %42 = vector.shape_cast %39 : vector<1x128xf32> to vector<1x1x128xf32>
    tpu.vector_store %arg5[%c0_20, %c0_21, %c0_22], %42 {strides = array<i32>} : memref<1x1x128xf32, #tpu.memory_space<vmem>>, vector<1x1x128xf32>,
    return
  }
  func.func @transform_0(%arg0: i32, %arg1: memref<7xf32, #tpu.memory_space<smem>>) -> (i32, i32) {
    %c0_i32 = arith.constant 0 : i32
    %c0_i32_0 = arith.constant 0 : i32
    return %arg0, %c0_i32 : i32, i32
  }
  func.func @transform_1(%arg0: i32, %arg1: memref<7xf32, #tpu.memory_space<smem>>) -> (i32, i32, i32) {
    %c0_i32 = arith.constant 0 : i32
    %c0_i32_0 = arith.constant 0 : i32
    %c0_i32_1 = arith.constant 0 : i32
    return %c0_i32, %arg0, %c0_i32_0 : i32, i32, i32
  }
  func.func @transform_2(%arg0: i32, %arg1: memref<7xf32, #tpu.memory_space<smem>>) -> (i32, i32, i32) {
    %c0_i32 = arith.constant 0 : i32
    %c0_i32_0 = arith.constant 0 : i32
    %c0_i32_1 = arith.constant 0 : i32
    return %c0_i32, %arg0, %c0_i32_0 : i32, i32, i32
  }
  func.func @transform_3(%arg0: i32, %arg1: memref<7xf32, #tpu.memory_space<smem>>) -> (i32, i32, i32) {
    %c0_i32 = arith.constant 0 : i32
    %c0_i32_0 = arith.constant 0 : i32
    %c0_i32_1 = arith.constant 0 : i32
    return %c0_i32, %arg0, %c0_i32_0 : i32, i32, i32
  }
}

</mosaic_0001>

<bundles_post_ra>
// kernel: tpu_custom_call.1
= control target key start
LH: loop header
LB: loop body
LE: loop exit
PB: predicated region body
PF: predicated region fallthrough
CT: control target
= control target key end

     0   :  { %s296_s0 = inlined_call_operand.hbm [shape: f32[7], index: 0, kind: input, shape index: {}]   ;;  %s297_s1 = inlined_call_operand.vmem [shape: f32[1,128], index: 1, kind: input, shape index: {}]   ;;  %s298_s2 = inlined_call_operand.hbm [shape: f32[3,1,128], index: 2, kind: output, shape index: {0}]   ;;  %s299_s3 = inlined_call_operand.hbm [shape: f32[3,1,128], index: 3, kind: output, shape index: {1}]   ;;  %s300_s4 = inlined_call_operand.hbm [shape: f32[1,1,128], index: 4, kind: output, shape index: {2}]  }
   0x1   :  { %s108_s17 = scalar_lea.hbm %s296_s0, 16 }
   0x2   :  { %p109_p0 = scmp.ne.s32.totalorder %s296_s0, %s108_s17  ;;  %p112_p1 = scmp.lt.u32.totalorder %s108_s17, %s296_s0 }
   0x4   :  { %p114_p2 = pnand %p112_p1, %p109_p0 }
   0x6   :  { %117 = shalt.err (!%p114_p2)  }
   0x7   :  { %s190_s22 = smov [#allocation3]  }
   0x8   :  { %11 = dma.hbm_to_smem %s296_s0, 16, %s190_s22, [#allocation2] }
   0x9   :  { %184 = dma.done.wait [#allocation2], 16 }
   0xa   :  { %185 = vsyncadd [#allocation2], 4294967280 }
   0xb   :  { %13 = sfence }
   0xc   :  { %14 = vsyncpa [#allocation5], 0  ;;  %s98_s25 = sld [smem:[#allocation3 + $0x3]]  ;;  %s99_s26 = sld [smem:[#allocation3 + $0x4]] }
   0xd   :  { %s100_s27 = sld [smem:[#allocation3 + $0x5]]  ;;  %s19_s28 = sld [smem:[#allocation3]] }
   0xe   :  { %15 = vsyncpa [#allocation7], 0  ;;  %s96_s29 = sld [smem:[#allocation3 + $0x1]]  ;;  %s97_s30 = sld [smem:[#allocation3 + $0x2]]  ;;  %v18_v0 = vld [vmem:[%s297_s1] sm:$0x1] }
   0xf   :  { %s101_s5 = sld [smem:[#allocation3 + $0x6]]  ;;  %s191_s8 = smov [#allocation6]  }
  0x10   :  { %s68_s9 = sshll.u32 %s191_s8, 4  ;;  %s192_s0 = smov [#allocation4]   ;;  %s236_s9 = int_to_ptr.vmem [resolvable:$true] %s68_s9 }
  0x11   :  { %s56_s10 = sshll.u32 %s192_s0, 4  ;;  %s193_s11 = smov [#allocation8]   ;;  %s238_s10 = int_to_ptr.vmem [resolvable:$true] %s56_s10 }
  0x12   :  { %v34_v1 = vstv %s98_s25  ;;  %v38_v2 = vstv %s99_s26  ;;  %s81_s1 = sshll.u32 %s193_s11, 4  ;;  %s118_s12 = scalar_lea.vmem %s236_s9, 48  ;;  %s240_s1 = int_to_ptr.vmem [resolvable:$true] %s81_s1 }
  0x13   :  { %v35_v3 = vmul.f32 %v34_v1, %v18_v0  ;;  %v39_v4 = vmul.f32 %v38_v2, %v18_v0  ;;  %v43_v5 = vstv %s100_s27  ;;  %v20_v6 = vstv %s19_s28  ;;  %p119_p3 = scmp.ne.s32.totalorder %s236_s9, %s118_s12  ;;  %s122_s13 = scalar_lea.vmem %s236_s9, 64 }
  0x14   :  { %v44_v7 = vmul.f32 %v43_v5, %v18_v0  ;;  %v21_v8 = vmul.f32 %v20_v6, %v18_v0  ;;  %v24_v9 = vstv %s96_s29  ;;  %v29_v10 = vstv %s97_s30  ;;  %p123_p4 = scmp.lt.s32.totalorder %s236_s9, %s236_s9  ;;  %p124_p5 = scmp.lt.s32.totalorder %s122_s13, %s118_s12 }
  0x15   :  { %36 = vst [vmem:[#allocation6] sm:$0x1] %v35_v3  ;;  %41 = vst [vmem:[#allocation6 + $0x1] sm:$0x1] %v39_v4  ;;  %v25_v11 = vmul.f32 %v24_v9, %v18_v0  ;;  %v30_v12 = vmul.f32 %v29_v10, %v18_v0  ;;  %v48_v13 = vstv %s101_s5 }
  0x16   :  { %46 = vst [vmem:[#allocation6 + $0x2] sm:$0x1] %v44_v7  ;;  %22 = vst [vmem:[#allocation4] sm:$0x1] %v21_v8  ;;  %v49_v14 = vmul.f32 %v48_v13, %v18_v0  ;;  %p125_p6 = por %p124_p5, %p123_p4 }
  0x17   :  { %27 = vst [vmem:[#allocation4 + $0x1] sm:$0x1] %v25_v11  ;;  %32 = vst [vmem:[#allocation4 + $0x2] sm:$0x1] %v30_v12 }
  0x18   :  { %p126_p7 = pnand %p125_p6, %p119_p3 }
  0x1a   :  { %129 = shalt.err (!%p126_p7)
}
  0x1b   :  { %s130_s16 = scalar_lea.hbm %s299_s3, 48 }
  0x1c   :  { %p131_p8 = scmp.ne.s32.totalorder %s299_s3, %s130_s16  ;;  %p134_p9 = scmp.lt.u32.totalorder %s130_s16, %s299_s3 }
  0x1e   :  { %p136_p10 = pnand %p134_p9, %p131_p8 }
  0x20   :  { %139 = shalt.err (!%p136_p10)
}
  0x21   :  { %s194_s21 = smov 16   ;;  %s195_s22 = smov 1   ;;  %50 = vst [vmem:[#allocation8] sm:$0x1] %v49_v14 }
  0x22   :  { %74 = dma.vmem_to_hbm [thread:$0]  %s236_s9, 48, %s299_s3, [#allocation7], %s194_s21, %s194_s21, %s195_s22  }
  0x23   :  { %s140_s25 = scalar_lea.vmem %s238_s10, 48  ;;  %s144_s26 = scalar_lea.vmem %s238_s10, 64 }
  0x24   :  { %p141_p11 = scmp.ne.s32.totalorder %s238_s10, %s140_s25  ;;  %p145_p12 = scmp.lt.s32.totalorder %s238_s10, %s238_s10 }
  0x25   :  { %p146_p13 = scmp.lt.s32.totalorder %s144_s26, %s140_s25 }
  0x27   :  { %p147_p0 = por %p146_p13, %p145_p12 }
  0x29   :  { %p148_p1 = pnand %p147_p0, %p141_p11 }
  0x2b   :  { %151 = shalt.err (!%p148_p1)
}
  0x2c   :  { %s152_s29 = scalar_lea.hbm %s298_s2, 48 }
  0x2d   :  { %p153_p2 = scmp.ne.s32.totalorder %s298_s2, %s152_s29  ;;  %p156_p3 = scmp.lt.u32.totalorder %s152_s29, %s298_s2 }
  0x2f   :  { %p158_p4 = pnand %p156_p3, %p153_p2 }
  0x31   :  { %161 = shalt.err (!%p158_p4)
}
  0x32   :  { %62 = dma.vmem_to_hbm [thread:$0]  %s238_s10, 48, %s298_s2, [#allocation5], %s194_s21, %s194_s21, %s195_s22  }
  0x33   :  { %s162_s9 = scalar_lea.vmem %s240_s1, 16  ;;  %s166_s0 = scalar_lea.vmem %s240_s1, 32 }
  0x34   :  { %p163_p5 = scmp.ne.s32.totalorder %s240_s1, %s162_s9  ;;  %p167_p6 = scmp.lt.s32.totalorder %s240_s1, %s240_s1 }
  0x35   :  { %p168_p7 = scmp.lt.s32.totalorder %s166_s0, %s162_s9 }
  0x37   :  { %p169_p8 = por %p168_p7, %p167_p6 }
  0x39   :  { %p170_p9 = pnand %p169_p8, %p163_p5 }
  0x3b   :  { %173 = shalt.err (!%p170_p9)
}
  0x3c   :  { %s174_s13 = scalar_lea.hbm %s300_s4, 16 }
  0x3d   :  { %p175_p10 = scmp.ne.s32.totalorder %s300_s4, %s174_s13  ;;  %p178_p11 = scmp.lt.u32.totalorder %s174_s13, %s300_s4 }
  0x3f   :  { %p180_p12 = pnand %p178_p11, %p175_p10 }
  0x41   :  { %183 = shalt.err (!%p180_p12)
}
  0x42   :  { %84 = dma.vmem_to_hbm [thread:$0]  %s240_s1, 16, %s300_s4, [#allocation7]  }
  0x43   :  { %186 = dma.done.wait [#allocation5], 48  }
  0x44   :  { %187 = vsyncadd [#allocation5], 4294967248 }
  0x45   :  { %188 = dma.done.wait [#allocation7], 64  }
  0x46   :  { %189 = vsyncadd [#allocation7], 4294967232 }
  0x47   :  { %94 = vsyncpa [#allocation5], 1 }
  0x48   :  { %95 = vsyncpa [#allocation7], 1 }

</bundles_post_ra>
